<compile_context>
chip_gen: v5e
topology: v5e:2x2
jax: 0.10.0
libtpu: 0.0.40
codegen_flags: <defaults>
</compile_context>

<pallas_src>
import functools

import jax
import jax.numpy as jnp
from jax.experimental import pallas as pl
from jax.experimental.pallas import tpu as pltpu


def _meta_dynamics_kernel(
    x_ref, eps_ref,
    w_dom_ref, b_dom_ref,
    w_init_ref, b_init_ref,
    w_head_ref, b_head_ref,
    w_za_ref, w_zc_ref, b_tr_ref,
    w_dec_ref, b_dec_ref,
    x_out_ref, head_out_ref,
    z_scr,
    *, init_dim, latent_dim, T,
):
    L = latent_dim
    x = x_ref[...]          # (M, T)  -- M = N*V (batch folded into matmul M-dim)
    eps = eps_ref[...]      # (M, L)

    # --- latent_domain: DomainEncoder (dense surrogate) -------------------
    z_c = jnp.tanh(
        jnp.dot(x, w_dom_ref[...], preferred_element_type=jnp.float32)
        + b_dom_ref[...]
    )                                                        # (M, L)

    # --- latent_initial: InitialEncoder on x[:, :init_dim] ----------------
    x0 = x[:, :init_dim]                                     # (M, I)
    h0 = jnp.tanh(
        jnp.dot(x0, w_init_ref[...], preferred_element_type=jnp.float32)
        + b_init_ref[...]
    )                                                        # (M, L)

    # fused [mu_0 | logvar_0] head: one (L, 2L) matmul, one clip
    head = jnp.clip(
        jnp.dot(h0, w_head_ref[...], preferred_element_type=jnp.float32)
        + b_head_ref[...],
        -100.0, 85.0,
    )                                                        # (M, 2L)
    head_out_ref[...] = head

    mu0 = head[:, :L]
    logvar0 = head[:, L:]

    # reparameterization: z0 = mu + eps * exp(0.5 * logvar)
    z0 = mu0 + eps * jnp.exp(0.5 * logvar0)                  # (M, L)

    # --- time_modeling: deterministic Transition(z_prev, z_c) -------------
    # z_t = tanh(z_prev @ W_za + (z_c @ W_zc + b))  (== linear on concat)
    zc_proj = (
        jnp.dot(z_c, w_zc_ref[...], preferred_element_type=jnp.float32)
        + b_tr_ref[...]
    )                                                        # (M, L), hoisted
    w_za = w_za_ref[...]                                     # hoisted load

    z_scr[0] = z0
    z_prev = z0
    for t in range(1, T):                                    # static unroll (T small)
        z_prev = jnp.tanh(
            jnp.dot(z_prev, w_za, preferred_element_type=jnp.float32) + zc_proj
        )
        z_scr[t] = z_prev                                    # bound live range

    # --- Decoder (dense surrogate): single fused pass over all timesteps --
    # x_[t, m] = sum_l z[t, m, l] * w_dec[l] + b_dec
    z_all = z_scr[...]                                       # (T, M, L)
    x_tm = jnp.sum(z_all * w_dec_ref[...], axis=-1) + b_dec_ref[...]   # (T, M)
    x_out_ref[...] = x_tm


class MetaDynamicsInstancePallas:
    """JAX/Pallas counterpart of MetaDynamics_Instance (synthetic weights)."""

    def __init__(self, num_channel, latent_dim, obs_dim, init_dim, rnn_type,
                 key=jax.random.PRNGKey(0)):
        self.nf = num_channel
        self.latent_dim = latent_dim
        self.obs_dim = obs_dim
        self.init_dim = init_dim
        self.rnn_type = rnn_type

        L, T0, I = latent_dim, obs_dim, init_dim
        ks = jax.random.split(key, 8)

        def init_w(k, shape):
            fan_in = shape[0]
            return jax.random.normal(k, shape, jnp.float32) / jnp.sqrt(fan_in)

        # deterministic synthetic parameters
        self.w_dom = init_w(ks[0], (T0, L))
        self.b_dom = jnp.zeros((1, L), jnp.float32)
        self.w_init = init_w(ks[1], (I, L))
        self.b_init = jnp.zeros((1, L), jnp.float32)
        # mu_0 / var_0 fused into one head: [mu | logvar]
        w_mu = init_w(ks[2], (L, L))
        w_var = init_w(ks[3], (L, L))
        self.w_head = jnp.concatenate([w_mu, w_var], axis=1)          # (L, 2L)
        self.b_head = jnp.concatenate(
            [jnp.zeros((1, L), jnp.float32), jnp.full((1, L), -1.0, jnp.float32)],
            axis=1)                                                   # (1, 2L)
        self.w_za = init_w(ks[4], (L, L))
        self.w_zc = init_w(ks[5], (L, L))
        self.b_tr = jnp.zeros((1, L), jnp.float32)
        self.w_dec = init_w(ks[6], (1, L))                            # row vector
        self.b_dec = jnp.zeros((1, 1), jnp.float32)

    def _param_list(self):
        return [
            self.w_dom, self.b_dom,
            self.w_init, self.b_init,
            self.w_head, self.b_head,
            self.w_za, self.w_zc, self.b_tr,
            self.w_dec, self.b_dec,
        ]

    def forward(self, x, y=None, D_x=None, D_y=None, heart_name=None,
                noise_key=jax.random.PRNGKey(1)):
        N, V, T = x.shape
        assert T == self.obs_dim
        L = self.latent_dim
        M = N * V

        # randn_like(std) for the reparameterization trick
        eps = jax.random.normal(noise_key, (N, V, L), jnp.float32)

        # fold batch into the matmul M-dimension (layout plumbing in XLA)
        x2d = x.reshape(M, T)
        eps2d = eps.reshape(M, L)

        kernel = functools.partial(
            _meta_dynamics_kernel, init_dim=self.init_dim, latent_dim=L, T=T)

        vmem_spec = pl.BlockSpec(memory_space=pltpu.MemorySpace.VMEM)
        n_inputs = 2 + len(self._param_list())

        # Single invocation (no grid): whole problem fits comfortably in VMEM
        # at these sizes; removes per-grid-step pipeline overhead entirely.
        # TODO(synk): if N*V grows large, re-introduce a batch grid axis marked
        #             "parallel" (v7x megacore) and tile M against VMEM budget.
        x_tm, head = pl.pallas_call(
            kernel,
            out_shape=(
                jax.ShapeDtypeStruct((T, M), jnp.float32),      # x_ as (T, M)
                jax.ShapeDtypeStruct((M, 2 * L), jnp.float32),  # [mu | logvar]
            ),
            in_specs=[vmem_spec] * n_inputs,
            out_specs=(vmem_spec, vmem_spec),
            scratch_shapes=[pltpu.VMEM((T, M, L), jnp.float32)],
        )(x2d, eps2d, *self._param_list())

        # wrapper-side layout plumbing back to module shapes
        x_ = jnp.transpose(x_tm, (1, 0)).reshape(N, V, T)
        mu_0 = head[:, :L].reshape(N, V, L)
        logvar_0 = head[:, L:].reshape(N, V, L)

        return ((x_,), (None, None, None, None, mu_0, logvar_0)), eps

    # pure-JAX reference of the same computation (for correctness checking)
    def forward_ref(self, x, eps):
        N, V, T = x.shape
        L = self.latent_dim
        z_c = jnp.tanh(jnp.einsum('nvt,tl->nvl', x, self.w_dom) + self.b_dom)
        h0 = jnp.tanh(jnp.einsum('nvi,il->nvl', x[:, :, :self.init_dim],
                                 self.w_init) + self.b_init)
        head = jnp.clip(jnp.einsum('nvl,lm->nvm', h0, self.w_head)
                        + self.b_head, -100.0, 85.0)
        mu0, lv0 = head[..., :L], head[..., L:]
        z0 = mu0 + eps * jnp.exp(0.5 * lv0)
        zc_proj = jnp.einsum('nvl,lm->nvm', z_c, self.w_zc) + self.b_tr
        zs, z_prev = [z0], z0
        for _ in range(1, T):
            z_prev = jnp.tanh(jnp.einsum('nvl,lm->nvm', z_prev, self.w_za)
                              + zc_proj)
            zs.append(z_prev)
        z = jnp.stack(zs, axis=-1)                        # (N, V, L, T)
        x_ = jnp.einsum('nvlt,l->nvt', z, self.w_dec[0]) + self.b_dec[0, 0]
        return x_, mu0, lv0


if __name__ == "__main__":
    # small shapes implied by the forward: x is (N, V, T)
    N, V, T = 2, 16, 8
    num_channel, latent_dim, obs_dim, init_dim = 4, 32, T, 4

    model = MetaDynamicsInstancePallas(num_channel, latent_dim, obs_dim,
                                       init_dim, rnn_type="gru",
                                       key=jax.random.PRNGKey(0))

    x = jax.random.normal(jax.random.PRNGKey(0), (N, V, T), jnp.float32)

    ((x_,), (_, _, _, _, mu_0, logvar_0)), eps = model.forward(
        x, noise_key=jax.random.PRNGKey(1))
    jax.block_until_ready((x_, mu_0, logvar_0))

    # verify against the pure-JAX reference (same eps, same params)
    x_ref, mu_ref, lv_ref = model.forward_ref(x, eps)
    assert jnp.allclose(x_, x_ref, rtol=2e-4, atol=2e-4), "x_ mismatch"
    assert jnp.allclose(mu_0, mu_ref, rtol=2e-4, atol=2e-4), "mu_0 mismatch"
    assert jnp.allclose(logvar_0, lv_ref, rtol=2e-4, atol=2e-4), "logvar_0 mismatch"

    print("KERNEL_OK")
</pallas_src>

<mosaic_0001>
module attributes {stable_mosaic.version = 11 : i64} {
  func.func @_meta_dynamics_kernel(%arg0: memref<32x8xf32, #tpu.memory_space<vmem>>, %arg1: memref<32x32xf32, #tpu.memory_space<vmem>>, %arg2: memref<8x32xf32, #tpu.memory_space<vmem>>, %arg3: memref<1x32xf32, #tpu.memory_space<vmem>>, %arg4: memref<4x32xf32, #tpu.memory_space<vmem>>, %arg5: memref<1x32xf32, #tpu.memory_space<vmem>>, %arg6: memref<32x64xf32, #tpu.memory_space<vmem>>, %arg7: memref<1x64xf32, #tpu.memory_space<vmem>>, %arg8: memref<32x32xf32, #tpu.memory_space<vmem>>, %arg9: memref<32x32xf32, #tpu.memory_space<vmem>>, %arg10: memref<1x32xf32, #tpu.memory_space<vmem>>, %arg11: memref<1x32xf32, #tpu.memory_space<vmem>>, %arg12: memref<1x1xf32, #tpu.memory_space<vmem>>, %arg13: memref<8x32xf32, #tpu.memory_space<vmem>>, %arg14: memref<32x64xf32, #tpu.memory_space<vmem>>, %arg15: memref<8x32x32xf32, #tpu.memory_space<vmem>>) attributes {dimension_semantics = [], scalar_prefetch = 0 : i64, scratch_operands = 1 : i64, tpu.core_type = #tpu.core_type<tc>} {
    %c0 = arith.constant 0 : index
    %c0_0 = arith.constant 0 : index
    %0 = vector.load %arg0[%c0, %c0_0] : memref<32x8xf32, #tpu.memory_space<vmem>>, vector<32x8xf32>
    %c0_1 = arith.constant 0 : index
    %c0_2 = arith.constant 0 : index
    %1 = vector.load %arg1[%c0_1, %c0_2] : memref<32x32xf32, #tpu.memory_space<vmem>>, vector<32x32xf32>
    %c0_3 = arith.constant 0 : index
    %c0_4 = arith.constant 0 : index
    %2 = vector.load %arg2[%c0_3, %c0_4] : memref<8x32xf32, #tpu.memory_space<vmem>>, vector<8x32xf32>
    %cst = arith.constant dense<0.000000e+00> : vector<32x32xf32>
    %3 = tpu.matmul %0, %2, %cst {dimension_numbers = #tpu.dot_dimension_numbers<[1], [0], [0], [1], [0, 0, 1, 1], [], []>} : vector<32x8xf32>, vector<8x32xf32>, vector<32x32xf32> -> vector<32x32xf32>
    %c0_5 = arith.constant 0 : index
    %c0_6 = arith.constant 0 : index
    %4 = vector.load %arg3[%c0_5, %c0_6] : memref<1x32xf32, #tpu.memory_space<vmem>>, vector<1x32xf32>
    %5 = vector.broadcast %4 : vector<1x32xf32> to vector<32x32xf32>
    %6 = arith.addf %3, %5 : vector<32x32xf32>
    %7 = math.tanh %6 : vector<32x32xf32>
    %8 = vector.extract_strided_slice %0 {offsets = [0, 0], sizes = [32, 4], strides = [1, 1]} : vector<32x8xf32> to vector<32x4xf32>
    %c0_7 = arith.constant 0 : index
    %c0_8 = arith.constant 0 : index
    %9 = vector.load %arg4[%c0_7, %c0_8] : memref<4x32xf32, #tpu.memory_space<vmem>>, vector<4x32xf32>
    %cst_9 = arith.constant dense<0.000000e+00> : vector<32x32xf32>
    %10 = tpu.matmul %8, %9, %cst_9 {dimension_numbers = #tpu.dot_dimension_numbers<[1], [0], [0], [1], [0, 0, 1, 1], [], []>} : vector<32x4xf32>, vector<4x32xf32>, vector<32x32xf32> -> vector<32x32xf32>
    %c0_10 = arith.constant 0 : index
    %c0_11 = arith.constant 0 : index
    %11 = vector.load %arg5[%c0_10, %c0_11] : memref<1x32xf32, #tpu.memory_space<vmem>>, vector<1x32xf32>
    %12 = vector.broadcast %11 : vector<1x32xf32> to vector<32x32xf32>
    %13 = arith.addf %10, %12 : vector<32x32xf32>
    %14 = math.tanh %13 : vector<32x32xf32>
    %c0_12 = arith.constant 0 : index
    %c0_13 = arith.constant 0 : index
    %15 = vector.load %arg6[%c0_12, %c0_13] : memref<32x64xf32, #tpu.memory_space<vmem>>, vector<32x64xf32>
    %cst_14 = arith.constant dense<0.000000e+00> : vector<32x64xf32>
    %16 = tpu.matmul %14, %15, %cst_14 {dimension_numbers = #tpu.dot_dimension_numbers<[1], [0], [0], [1], [0, 0, 1, 1], [], []>} : vector<32x32xf32>, vector<32x64xf32>, vector<32x64xf32> -> vector<32x64xf32>
    %c0_15 = arith.constant 0 : index
    %c0_16 = arith.constant 0 : index
    %17 = vector.load %arg7[%c0_15, %c0_16] : memref<1x64xf32, #tpu.memory_space<vmem>>, vector<1x64xf32>
    %18 = vector.broadcast %17 : vector<1x64xf32> to vector<32x64xf32>
    %19 = arith.addf %16, %18 : vector<32x64xf32>
    %cst_17 = arith.constant -1.000000e+02 : f32
    %cst_18 = arith.constant 8.500000e+01 : f32
    %20 = vector.broadcast %cst_17 : f32 to vector<32x64xf32>
    %21 = arith.maximumf %20, %19 : vector<32x64xf32>
    %22 = vector.broadcast %cst_18 : f32 to vector<32x64xf32>
    %23 = arith.minimumf %22, %21 : vector<32x64xf32>
    %c0_19 = arith.constant 0 : index
    %c0_20 = arith.constant 0 : index
    %24 = vector.load %arg14[%c0_19, %c0_20] : memref<32x64xf32, #tpu.memory_space<vmem>>, vector<32x64xf32>
    tpu.vector_store %arg14[%c0_19, %c0_20], %23 {strides = array<i32>} : memref<32x64xf32, #tpu.memory_space<vmem>>, vector<32x64xf32>,
    %25 = vector.extract_strided_slice %23 {offsets = [0, 0], sizes = [32, 32], strides = [1, 1]} : vector<32x64xf32> to vector<32x32xf32>
    %26 = vector.extract_strided_slice %23 {offsets = [0, 32], sizes = [32, 32], strides = [1, 1]} : vector<32x64xf32> to vector<32x32xf32>
    %cst_21 = arith.constant 5.000000e-01 : f32
    %27 = vector.broadcast %cst_21 : f32 to vector<32x32xf32>
    %28 = arith.mulf %27, %26 : vector<32x32xf32>
    %29 = math.exp %28 : vector<32x32xf32>
    %30 = arith.mulf %1, %29 : vector<32x32xf32>
    %31 = arith.addf %25, %30 : vector<32x32xf32>
    %c0_22 = arith.constant 0 : index
    %c0_23 = arith.constant 0 : index
    %32 = vector.load %arg9[%c0_22, %c0_23] : memref<32x32xf32, #tpu.memory_space<vmem>>, vector<32x32xf32>
    %cst_24 = arith.constant dense<0.000000e+00> : vector<32x32xf32>
    %33 = tpu.matmul %7, %32, %cst_24 {dimension_numbers = #tpu.dot_dimension_numbers<[1], [0], [0], [1], [0, 0, 1, 1], [], []>} : vector<32x32xf32>, vector<32x32xf32>, vector<32x32xf32> -> vector<32x32xf32>
    %c0_25 = arith.constant 0 : index
    %c0_26 = arith.constant 0 : index
    %34 = vector.load %arg10[%c0_25, %c0_26] : memref<1x32xf32, #tpu.memory_space<vmem>>, vector<1x32xf32>
    %35 = vector.broadcast %34 : vector<1x32xf32> to vector<32x32xf32>
    %36 = arith.addf %33, %35 : vector<32x32xf32>
    %c0_27 = arith.constant 0 : index
    %c0_28 = arith.constant 0 : index
    %37 = vector.load %arg8[%c0_27, %c0_28] : memref<32x32xf32, #tpu.memory_space<vmem>>, vector<32x32xf32>
    %c0_29 = arith.constant 0 : index
    %c0_30 = arith.constant 0 : index
    %c0_31 = arith.constant 0 : index
    %38 = vector.load %arg15[%c0_29, %c0_30, %c0_31] : memref<8x32x32xf32, #tpu.memory_space<vmem>>, vector<1x32x32xf32>
    %39 = vector.shape_cast %38 : vector<1x32x32xf32> to vector<32x32xf32>
    %40 = vector.shape_cast %31 : vector<32x32xf32> to vector<1x32x32xf32>
    tpu.vector_store %arg15[%c0_29, %c0_30, %c0_31], %40 {strides = array<i32>} : memref<8x32x32xf32, #tpu.memory_space<vmem>>, vector<1x32x32xf32>,
    %cst_32 = arith.constant dense<0.000000e+00> : vector<32x32xf32>
    %41 = tpu.matmul %31, %37, %cst_32 {dimension_numbers = #tpu.dot_dimension_numbers<[1], [0], [0], [1], [0, 0, 1, 1], [], []>} : vector<32x32xf32>, vector<32x32xf32>, vector<32x32xf32> -> vector<32x32xf32>
    %42 = arith.addf %41, %36 : vector<32x32xf32>
    %43 = math.tanh %42 : vector<32x32xf32>
    %c1 = arith.constant 1 : index
    %c0_33 = arith.constant 0 : index
    %c0_34 = arith.constant 0 : index
    %44 = vector.load %arg15[%c1, %c0_33, %c0_34] : memref<8x32x32xf32, #tpu.memory_space<vmem>>, vector<1x32x32xf32>
    %45 = vector.shape_cast %44 : vector<1x32x32xf32> to vector<32x32xf32>
    %46 = vector.shape_cast %43 : vector<32x32xf32> to vector<1x32x32xf32>
    tpu.vector_store %arg15[%c1, %c0_33, %c0_34], %46 {strides = array<i32>} : memref<8x32x32xf32, #tpu.memory_space<vmem>>, vector<1x32x32xf32>,
    %cst_35 = arith.constant dense<0.000000e+00> : vector<32x32xf32>
    %47 = tpu.matmul %43, %37, %cst_35 {dimension_numbers = #tpu.dot_dimension_numbers<[1], [0], [0], [1], [0, 0, 1, 1], [], []>} : vector<32x32xf32>, vector<32x32xf32>, vector<32x32xf32> -> vector<32x32xf32>
    %48 = arith.addf %47, %36 : vector<32x32xf32>
    %49 = math.tanh %48 : vector<32x32xf32>
    %c2 = arith.constant 2 : index
    %c0_36 = arith.constant 0 : index
    %c0_37 = arith.constant 0 : index
    %50 = vector.load %arg15[%c2, %c0_36, %c0_37] : memref<8x32x32xf32, #tpu.memory_space<vmem>>, vector<1x32x32xf32>
    %51 = vector.shape_cast %50 : vector<1x32x32xf32> to vector<32x32xf32>
    %52 = vector.shape_cast %49 : vector<32x32xf32> to vector<1x32x32xf32>
    tpu.vector_store %arg15[%c2, %c0_36, %c0_37], %52 {strides = array<i32>} : memref<8x32x32xf32, #tpu.memory_space<vmem>>, vector<1x32x32xf32>,
    %cst_38 = arith.constant dense<0.000000e+00> : vector<32x32xf32>
    %53 = tpu.matmul %49, %37, %cst_38 {dimension_numbers = #tpu.dot_dimension_numbers<[1], [0], [0], [1], [0, 0, 1, 1], [], []>} : vector<32x32xf32>, vector<32x32xf32>, vector<32x32xf32> -> vector<32x32xf32>
    %54 = arith.addf %53, %36 : vector<32x32xf32>
    %55 = math.tanh %54 : vector<32x32xf32>
    %c3 = arith.constant 3 : index
    %c0_39 = arith.constant 0 : index
    %c0_40 = arith.constant 0 : index
    %56 = vector.load %arg15[%c3, %c0_39, %c0_40] : memref<8x32x32xf32, #tpu.memory_space<vmem>>, vector<1x32x32xf32>
    %57 = vector.shape_cast %56 : vector<1x32x32xf32> to vector<32x32xf32>
    %58 = vector.shape_cast %55 : vector<32x32xf32> to vector<1x32x32xf32>
    tpu.vector_store %arg15[%c3, %c0_39, %c0_40], %58 {strides = array<i32>} : memref<8x32x32xf32, #tpu.memory_space<vmem>>, vector<1x32x32xf32>,
    %cst_41 = arith.constant dense<0.000000e+00> : vector<32x32xf32>
    %59 = tpu.matmul %55, %37, %cst_41 {dimension_numbers = #tpu.dot_dimension_numbers<[1], [0], [0], [1], [0, 0, 1, 1], [], []>} : vector<32x32xf32>, vector<32x32xf32>, vector<32x32xf32> -> vector<32x32xf32>
    %60 = arith.addf %59, %36 : vector<32x32xf32>
    %61 = math.tanh %60 : vector<32x32xf32>
    %c4 = arith.constant 4 : index
    %c0_42 = arith.constant 0 : index
    %c0_43 = arith.constant 0 : index
    %62 = vector.load %arg15[%c4, %c0_42, %c0_43] : memref<8x32x32xf32, #tpu.memory_space<vmem>>, vector<1x32x32xf32>
    %63 = vector.shape_cast %62 : vector<1x32x32xf32> to vector<32x32xf32>
    %64 = vector.shape_cast %61 : vector<32x32xf32> to vector<1x32x32xf32>
    tpu.vector_store %arg15[%c4, %c0_42, %c0_43], %64 {strides = array<i32>} : memref<8x32x32xf32, #tpu.memory_space<vmem>>, vector<1x32x32xf32>,
    %cst_44 = arith.constant dense<0.000000e+00> : vector<32x32xf32>
    %65 = tpu.matmul %61, %37, %cst_44 {dimension_numbers = #tpu.dot_dimension_numbers<[1], [0], [0], [1], [0, 0, 1, 1], [], []>} : vector<32x32xf32>, vector<32x32xf32>, vector<32x32xf32> -> vector<32x32xf32>
    %66 = arith.addf %65, %36 : vector<32x32xf32>
    %67 = math.tanh %66 : vector<32x32xf32>
    %c5 = arith.constant 5 : index
    %c0_45 = arith.constant 0 : index
    %c0_46 = arith.constant 0 : index
    %68 = vector.load %arg15[%c5, %c0_45, %c0_46] : memref<8x32x32xf32, #tpu.memory_space<vmem>>, vector<1x32x32xf32>
    %69 = vector.shape_cast %68 : vector<1x32x32xf32> to vector<32x32xf32>
    %70 = vector.shape_cast %67 : vector<32x32xf32> to vector<1x32x32xf32>
    tpu.vector_store %arg15[%c5, %c0_45, %c0_46], %70 {strides = array<i32>} : memref<8x32x32xf32, #tpu.memory_space<vmem>>, vector<1x32x32xf32>,
    %cst_47 = arith.constant dense<0.000000e+00> : vector<32x32xf32>
    %71 = tpu.matmul %67, %37, %cst_47 {dimension_numbers = #tpu.dot_dimension_numbers<[1], [0], [0], [1], [0, 0, 1, 1], [], []>} : vector<32x32xf32>, vector<32x32xf32>, vector<32x32xf32> -> vector<32x32xf32>
    %72 = arith.addf %71, %36 : vector<32x32xf32>
    %73 = math.tanh %72 : vector<32x32xf32>
    %c6 = arith.constant 6 : index
    %c0_48 = arith.constant 0 : index
    %c0_49 = arith.constant 0 : index
    %74 = vector.load %arg15[%c6, %c0_48, %c0_49] : memref<8x32x32xf32, #tpu.memory_space<vmem>>, vector<1x32x32xf32>
    %75 = vector.shape_cast %74 : vector<1x32x32xf32> to vector<32x32xf32>
    %76 = vector.shape_cast %73 : vector<32x32xf32> to vector<1x32x32xf32>
    tpu.vector_store %arg15[%c6, %c0_48, %c0_49], %76 {strides = array<i32>} : memref<8x32x32xf32, #tpu.memory_space<vmem>>, vector<1x32x32xf32>,
    %cst_50 = arith.constant dense<0.000000e+00> : vector<32x32xf32>
    %77 = tpu.matmul %73, %37, %cst_50 {dimension_numbers = #tpu.dot_dimension_numbers<[1], [0], [0], [1], [0, 0, 1, 1], [], []>} : vector<32x32xf32>, vector<32x32xf32>, vector<32x32xf32> -> vector<32x32xf32>
    %78 = arith.addf %77, %36 : vector<32x32xf32>
    %79 = math.tanh %78 : vector<32x32xf32>
    %c7 = arith.constant 7 : index
    %c0_51 = arith.constant 0 : index
    %c0_52 = arith.constant 0 : index
    %80 = vector.load %arg15[%c7, %c0_51, %c0_52] : memref<8x32x32xf32, #tpu.memory_space<vmem>>, vector<1x32x32xf32>
    %81 = vector.shape_cast %80 : vector<1x32x32xf32> to vector<32x32xf32>
    %82 = vector.shape_cast %79 : vector<32x32xf32> to vector<1x32x32xf32>
    tpu.vector_store %arg15[%c7, %c0_51, %c0_52], %82 {strides = array<i32>} : memref<8x32x32xf32, #tpu.memory_space<vmem>>, vector<1x32x32xf32>,
    %c0_53 = arith.constant 0 : index
    %c0_54 = arith.constant 0 : index
    %c0_55 = arith.constant 0 : index
    %83 = vector.load %arg15[%c0_53, %c0_54, %c0_55] : memref<8x32x32xf32, #tpu.memory_space<vmem>>, vector<8x32x32xf32>
    %c0_56 = arith.constant 0 : index
    %c0_57 = arith.constant 0 : index
    %84 = vector.load %arg11[%c0_56, %c0_57] : memref<1x32xf32, #tpu.memory_space<vmem>>, vector<1x32xf32>
    %85 = vector.shape_cast %84 : vector<1x32xf32> to vector<1x1x32xf32>
    %86 = vector.broadcast %85 : vector<1x1x32xf32> to vector<8x32x32xf32>
    %87 = arith.mulf %83, %86 : vector<8x32x32xf32>
    %cst_58 = arith.constant dense<0.000000e+00> : vector<8x32xf32>
    %88 = vector.multi_reduction <add>, %87, %cst_58 [2] : vector<8x32x32xf32> to vector<8x32xf32>
    %c0_59 = arith.constant 0 : index
    %c0_60 = arith.constant 0 : index
    %89 = vector.load %arg12[%c0_59, %c0_60] : memref<1x1xf32, #tpu.memory_space<vmem>>, vector<1x1xf32>
    %90 = vector.broadcast %89 : vector<1x1xf32> to vector<8x32xf32>
    %91 = arith.addf %88, %90 : vector<8x32xf32>
    %c0_61 = arith.constant 0 : index
    %c0_62 = arith.constant 0 : index
    %92 = vector.load %arg13[%c0_61, %c0_62] : memref<8x32xf32, #tpu.memory_space<vmem>>, vector<8x32xf32>
    tpu.vector_store %arg13[%c0_61, %c0_62], %91 {strides = array<i32>} : memref<8x32xf32, #tpu.memory_space<vmem>>, vector<8x32xf32>,
    return
  }
}

</mosaic_0001>

<bundles_post_ra>
// kernel: tpu_custom_call.1
= control target key start
LH: loop header
LB: loop body
LE: loop exit
PB: predicated region body
PF: predicated region fallthrough
CT: control target
= control target key end

     0   :  { %s1865_s0 = inlined_call_operand.vmem [shape: f32[32,8], index: 0, kind: input, shape index: {}]   ;;  %s1866_s1 = inlined_call_operand.vmem [shape: f32[32,32], index: 1, kind: input, shape index: {}]   ;;  %s1867_s2 = inlined_call_operand.vmem [shape: f32[8,32], index: 2, kind: input, shape index: {}]   ;;  %s1868_s3 = inlined_call_operand.hbm [shape: f32[1,32], index: 3, kind: input, shape index: {}]   ;;  %s1869_s4 = inlined_call_operand.vmem [shape: f32[4,32], index: 4, kind: input, shape index: {}]   ;;  %s1870_s5 = inlined_call_operand.vmem [shape: f32[1,32], index: 5, kind: input, shape index: {}]   ;;  %s1871_s6 = inlined_call_operand.hbm [shape: f32[32,64], index: 6, kind: input, shape index: {}]   ;;  %s1872_s7 = inlined_call_operand.vmem [shape: f32[1,64], index: 7, kind: input, shape index: {}]   ;;  %s1873_s8 = inlined_call_operand.hbm [shape: f32[32,32], index: 8, kind: input, shape index: {}]   ;;  %s1874_s9 = inlined_call_operand.hbm [shape: f32[32,32], index: 9, kind: input, shape index: {}]   ;;  %s1875_s10 = inlined_call_operand.vmem [shape: f32[1,32], index: 10, kind: input, shape index: {}]   ;;  %s1876_s11 = inlined_call_operand.vmem [shape: f32[1,32], index: 11, kind: input, shape index: {}]   ;;  %s1877_s12 = inlined_call_operand.<no memory space> [shape: f32[1,1], index: 12, kind: input, shape index: {}]   ;;  %s1878_s13 = inlined_call_operand.hbm [shape: f32[8,32], index: 13, kind: output, shape index: {0}]   ;;  %s1879_s14 = inlined_call_operand.hbm [shape: f32[32,64], index: 14, kind: output, shape index: {1}]  }
   0x1   :  { %v20_v0 = vstv %s1877_s12 }
   0x2   :  { %21 = vst [vmem:[#allocation3] sm:$0x1] %v20_v0 }
   0x3   :  { %22 = vsyncpa [#allocation5], 0 }
   0x4   :  { %23 = vsyncpa [#allocation8], 0 }
   0x5   :  { %24 = vsyncpa [#allocation11], 0 }
   0x6   :  { %25 = vsyncpa [#allocation6], 0  ;;  %s52_s17 = sshll.u32 %s1871_s6, 4  ;;  %s53_s17 = int_to_ptr.hbm [resolvable:$true] %s52_s17 }
   0x7   :  { %26 = vsyncpa [#allocation14], 0  ;;  %s1379_s18 = smov [#allocation7]   ;;  %s38_s22 = sshll.u32 %s1868_s3, 4  ;;  %s39_s22 = int_to_ptr.hbm [resolvable:$true] %s38_s22 }
   0x8   :  { %s54_s19 = sshll.u32 %s1379_s18, 4  ;;  %s1380_s23 = smov 128   ;;  %s55_s19 = int_to_ptr.vmem [resolvable:$true] %s54_s19 }
   0x9   :  { %s1381_s12 = smov 8   ;;  %s1382_s24 = smov [#allocation4]  }
   0xa   :  { %60 = dma.hbm_to_vmem [thread:$0]  %s53_s17, 512, %s55_s19, [#allocation8], %s1380_s23, %s1380_s23, %s1381_s12  }
   0xb   :  { %s40_s25 = sshll.u32 %s1382_s24, 4  ;;  %s67_s27 = sshll.u32 %s1873_s8, 4  ;;  %s41_s25 = int_to_ptr.vmem [resolvable:$true] %s40_s25  ;;  %s68_s27 = int_to_ptr.hbm [resolvable:$true] %s67_s27 }
   0xc   :  { %43 = dma.hbm_to_vmem [thread:$0]  %s39_s22, 16, %s41_s25, [#allocation5]  }
   0xd   :  { %s80_s3 = sshll.u32 %s1874_s9, 4  ;;  %s1383_s30 = smov [#allocation9]   ;;  %s81_s3 = int_to_ptr.hbm [resolvable:$true] %s80_s3 }
   0xe   :  { %s69_s15 = sshll.u32 %s1383_s30, 4  ;;  %s1384_s16 = smov [#allocation10]   ;;  %s70_s15 = int_to_ptr.vmem [resolvable:$true] %s69_s15 }
   0xf   :  { %75 = dma.hbm_to_vmem [thread:$0]  %s68_s27, 512, %s70_s15, [#allocation8], %s1380_s23, %s1380_s23, %s1381_s12  }
  0x10   :  { %s82_s17 = sshll.u32 %s1384_s16, 4  ;;  %s83_s17 = int_to_ptr.vmem [resolvable:$true] %s82_s17 }
  0x11   :  { %88 = dma.hbm_to_vmem [thread:$0]  %s81_s3, 512, %s83_s17, [#allocation11], %s1380_s23, %s1380_s23, %s1381_s12  }
  0x12   :  { %1369 = dma.done.wait [#allocation5], 16  }
  0x13   :  { %1370 = vsyncadd [#allocation5], 4294967280 }
  0x14   :  { %1371 = dma.done.wait [#allocation8], 1024  }
  0x15   :  { %1372 = vsyncadd [#allocation8], 4294966272 }
  0x16   :  { %1373 = dma.done.wait [#allocation11], 512  }
  0x17   :  { %1374 = vsyncadd [#allocation11], 4294966784  ;;  %vm184_vm0 = vcmask 1043456   ;;  %vm175_vm1 = vcmask 31744   ;;  %v170_v1 = vld [vmem:[%s1869_s4] sm:$0xf] }
  0x18   :  { %v111_v2 = vld [vmem:[%s1865_s0] sm:$0xff]  ;;  %1083 = vmatpush.msk.msra.mxu1 %vm184_vm0, %v170_v1  ;;  %v112_v3 = vld [vmem:[%s1865_s0 + $0x8] sm:$0xff]  ;;  %v113_v4 = vld [vmem:[%s1865_s0 + $0x10] sm:$0xff]  ;;  %vm124_vm2 = vcmask 64512   ;;  %vm229_vm3 = vcmask 261120   ;;  %vm279_vm4 = vcmask 523264  }
  0x19   :  { %1084 = vmatmul.msk.f32.vlgmr.msra.gmra.mxu1 %vm175_vm1, %v111_v2  ;;  %v114_v5 = vld [vmem:[%s1865_s0 + $0x18] sm:$0xff]  ;;  %v222_v8 = vld [vmem:[#allocation7 + $0x8] sm:$0xff]  ;;  %v221_v9 = vld [vmem:[#allocation7] sm:$0xff]  ;;  %v1385_v41 = vmov 0   ;;  %vm967_vm5 = vcmask 130112   ;;  %vm971_vm6 = vcmask 195712  }
  0x1a   :  { %v224_v6 = vld [vmem:[#allocation7 + $0x18] sm:$0xff]  ;;  %v223_v7 = vld [vmem:[#allocation7 + $0x10] sm:$0xff]  ;;  %v321_v40 = vld [vmem:[#allocation10 + $0x8] sm:$0xff]  ;;  %1138 = vset.pattern.permute.xlu0 %v1385_v41  ;;  %vm975_vm7 = vcmask 261312   ;;  %vm1026_vm8 = vcmask 1041409   ;;  %vm1028_vm9 = vcmask 1042434  }
  0x1b   :  { %254 = vmatpush.msra.mxu2 %v224_v6  ;;  %1124 = vmatpush.msra.mxu3 %v224_v6  ;;  %v1139_v10 = vld [vmem:[%s1870_s5] ss:$0 sm:$0xff]  ;;  %v322_v35 = vld [vmem:[#allocation10 + $0x10] sm:$0xff]  ;;  %v1531_v39 = vld [vmem:[#allocation4] ss:$0 sm:$0xff]  ;;  %s1059_s22 = sshll.u32 %s1879_s14, 4  ;;  %s1060_s22 = int_to_ptr.hbm [resolvable:$true] %s1059_s22 }
  0x1c   :  { %v119_v13 = vld [vmem:[%s1867_s2] sm:$0xff]  ;;  %v1529_v38 = vld [vmem:[#allocation9 + $0x10] sm:$0xff]  ;;  %v370_v42 = vld [vmem:[#allocation9 + $0x8] sm:$0xff]  ;;  %vm1030_vm10 = vcmask 1043459   ;;  %vm1032_vm11 = vcmask 1044484   ;;  %vm1034_vm12 = vcmask 1045509  }
  0x1d   :  { %255 = vmatpush.msra.mxu2 %v223_v7  ;;  %1125 = vmatpush.msra.mxu3 %v223_v7  ;;  %v1520_v24 = vld [vmem:[%s1872_s7] ss:$0 sm:$0xff]  ;;  %v320_v45 = vld [vmem:[#allocation10] sm:$0xff]  ;;  %s1386_s7 = smov 96   ;;  %vm1036_vm13 = vcmask 1046534   ;;  %s1388_s14 = smov [#allocation12]  }
  0x1e   :  { %152 = vmatpush.msra.mxu0 %v119_v13  ;;  %v323_v33 = vld [vmem:[#allocation10 + $0x18] sm:$0xff]  ;;  %v369_v46 = vld [vmem:[#allocation9] sm:$0xff]  ;;  %s1049_s25 = sshll.u32 %s1878_s13, 4  ;;  %vm1038_vm14 = vcmask 1047559   ;;  %s1050_s25 = int_to_ptr.hbm [resolvable:$true] %s1049_s25 }
  0x1f   :  { %256 = vmatpush.msra.mxu2 %v222_v8  ;;  %1126 = vmatpush.msra.mxu3 %v222_v8  ;;  %v372_v34 = vld [vmem:[#allocation9 + $0x18] sm:$0xff] }
  0x20   :  { %1079 = vmatmul.msk.f32.vlgmr.msra.gmra.mxu0 %vm124_vm2, %v111_v2  ;;  %451 = vmatpush.msrb.mxu1 %v372_v34  ;;  %v1142_v1 = vld [vmem:[#allocation3] ss:$0 sm:$0xff] }
  0x21   :  { %1085 = vmatmul.msk.f32.gmra.mxu1 %vm175_vm1, %v112_v3  ;;  %257 = vmatpush.msra.mxu2 %v221_v9 }
  0x22   :  { %1127 = vmatpush.msra.mxu3 %v221_v9  ;;  %401 = vmatpush.msrb.mxu0 %v372_v34 }
  0x23   :  { %452 = vmatpush.msrb.mxu1 %v1529_v38  ;;  %501 = vmatpush.msrb.mxu2 %v372_v34 }
  0x24   :  { %352 = vmatpush.msrb.mxu3 %v323_v33  ;;  %402 = vmatpush.msrb.mxu0 %v1529_v38 }
  0x25   :  { %453 = vmatpush.msrb.mxu1 %v370_v42  ;;  %502 = vmatpush.msrb.mxu2 %v1529_v38 }
  0x26   :  { %353 = vmatpush.msrb.mxu3 %v322_v35  ;;  %403 = vmatpush.msrb.mxu0 %v370_v42 }
  0x27   :  { %454 = vmatpush.msrb.mxu1 %v369_v46  ;;  %503 = vmatpush.msrb.mxu2 %v370_v42 }
  0x28   :  { %1080 = vmatmul.msk.f32.gmra.mxu0 %vm124_vm2, %v112_v3  ;;  %354 = vmatpush.msrb.mxu3 %v321_v40 }
  0x29   :  { %1086 = vmatmul.msk.f32.gmra.mxu1 %vm175_vm1, %v113_v4  ;;  %404 = vmatpush.msrb.mxu0 %v369_v46 }
  0x2a   :  { %355 = vmatpush.msrb.mxu3 %v320_v45  ;;  %651 = vmatpush.msra.mxu1 %v372_v34 }
  0x2b   :  { %601 = vmatpush.msra.mxu0 %v372_v34  ;;  %504 = vmatpush.msrb.mxu2 %v369_v46 }
  0x2c   :  { %652 = vmatpush.msra.mxu1 %v1529_v38 }
  0x2d   :  { %602 = vmatpush.msra.mxu0 %v1529_v38 }
  0x2e   :  { %653 = vmatpush.msra.mxu1 %v370_v42 }
  0x2f   :  { %603 = vmatpush.msra.mxu0 %v370_v42 }
  0x30   :  { %1081 = vmatmul.msk.f32.gmra.mxu0 %vm124_vm2, %v113_v4  ;;  %654 = vmatpush.msra.mxu1 %v369_v46 }
  0x31   :  { %1087 = vmatmul.msk.f32.gmra.mxu1 %vm175_vm1, %v114_v5  ;;  %604 = vmatpush.msra.mxu0 %v369_v46 }
  0x38   :  { %1082 = vmatmul.msk.f32.gmra.mxu0 %vm124_vm2, %v114_v5 }
  0x96   :  { %v205_v11 = vpop.f32.mrf.mxu1 }
  0x97   :  { %v206_v12 = vadd.f32 %v1139_v10, %v205_v11 }
  0x99   :  { %1145 = vtanh.f32 %v206_v12  ;;  %v115_v12 = vld [vmem:[%s1866_s1] sm:$0xff] }
  0x9d   :  { %v154_v36 = vpop.f32.mrf.mxu0 }
  0x9e   :  { %v208_v14 = vpop.f32.mrf.mxu1  ;;  %v155_v44 = vadd.f32 %v1531_v39, %v154_v36 }
  0x9f   :  { %v1146_v15 = vpop.eup %1145  ;;  %v209_v16 = vadd.f32 %v1139_v10, %v208_v14 }
  0xa0   :  { %1088 = vmatmul.msk.f32.vlgmr.msra.gmra.mxu2 %vm229_vm3, %v1146_v15 }
  0xa1   :  { %1147 = vtanh.f32 %v209_v16  ;;  %701 = vmatpush.msra.mxu2 %v372_v34  ;;  %v116_v16 = vld [vmem:[%s1866_s1 + $0x8] sm:$0xff] }
  0xa3   :  { %702 = vmatpush.msra.mxu2 %v1529_v38 }
  0xa5   :  { %v157_v52 = vpop.f32.mrf.mxu0  ;;  %703 = vmatpush.msra.mxu2 %v370_v42 }
  0xa6   :  { %v211_v17 = vpop.f32.mrf.mxu1  ;;  %v158_v54 = vadd.f32 %v1531_v39, %v157_v52 }
  0xa7   :  { %v1148_v18 = vpop.eup %1147  ;;  %v212_v19 = vadd.f32 %v1139_v10, %v211_v17  ;;  %704 = vmatpush.msra.mxu2 %v369_v46 }
  0xa8   :  { %1089 = vmatmul.msk.f32.vlgmr.msra.gmra.mxu3 %vm229_vm3, %v1148_v18 }
  0xa9   :  { %1149 = vtanh.f32 %v212_v19  ;;  %551 = vmatpush.msra.mxu3 %v372_v34  ;;  %v1577_v19 = vld [vmem:[%s1876_s11] ss:$0 sm:$0xff] }
  0xab   :  { %552 = vmatpush.msra.mxu3 %v1529_v38 }
  0xad   :  { %553 = vmatpush.msra.mxu3 %v370_v42  ;;  %v160_v6 = vpop.f32.mrf.mxu0  ;;  %v1144_v42 = vld [vmem:[%s1875_s10] ss:$0 sm:$0xff]  ;;  %s1387_s10 = smov [#allocation13]  }
  0xae   :  { %v214_v20 = vpop.f32.mrf.mxu1  ;;  %v161_v7 = vadd.f32 %v1531_v39, %v160_v6  ;;  %s1057_s19 = sshll.u32 %s1387_s10, 4  ;;  %s1058_s19 = int_to_ptr.vmem [resolvable:$true] %s1057_s19 }
  0xaf   :  { %v1150_v21 = vpop.eup %1149  ;;  %v215_v22 = vadd.f32 %v1139_v10, %v214_v20  ;;  %554 = vmatpush.msra.mxu3 %v369_v46 }
  0xb0   :  { %1090 = vmatmul.msk.f32.gmra.mxu3 %vm229_vm3, %v1150_v21 }
  0xb1   :  { %1151 = vtanh.f32 %v215_v22 }
  0xb5   :  { %v163_v8 = vpop.f32.mrf.mxu0 }
  0xb6   :  { %v164_v10 = vadd.f32 %v1531_v39, %v163_v8 }
  0xb7   :  { %v1152_v23 = vpop.eup %1151 }
  0xb8   :  { %1091 = vmatmul.msk.f32.gmra.mxu3 %vm229_vm3, %v1152_v23  ;;  %v117_v23 = vld [vmem:[%s1866_s1 + $0x10] sm:$0xff] }
 0x123   :  { %v259_v25 = vpop.f32.mrf.mxu2 }
 0x124   :  { %v260_v26 = vadd.f32 %v1520_v24, %v259_v25 }
 0x126   :  { %v271_v27 = vmax.f32 %v260_v26, -100.0 }
 0x128   :  { %v1523_v28 = vmin.f32 %v271_v27, 85.0 }
 0x12a   :  { %280 = vst.msk [vmem:[#allocation13] sm:$0xff] %vm279_vm4, %v1523_v28  ;;  %v284_v29 = vmul.f32 0.5, %v1523_v28 }
 0x12b   :  { %v262_v30 = vpop.f32.mrf.mxu3 }
 0x12c   :  { %v288_v31 = vmul.f32 1.442695, %v284_v29  ;;  %v263_v32 = vadd.f32 %v1520_v24, %v262_v30  ;;  %v118_v30 = vld [vmem:[%s1866_s1 + $0x18] sm:$0xff] }
 0x12e   :  { %v272_v37 = vmax.f32 %v263_v32, -100.0  ;;  %1153 = vpow2.f32 %v288_v31 }
 0x12f   :  { %1155 = vtanh.f32 %v155_v44 }
 0x130   :  { %v1533_v43 = vmin.f32 %v272_v37, 85.0 }
 0x132   :  { %281 = vst.msk [vmem:[#allocation13 + $0x8] sm:$0xff] %vm279_vm4, %v1533_v43  ;;  %v285_v47 = vmul.f32 0.5, %v1533_v43 }
 0x133   :  { %v265_v48 = vpop.f32.mrf.mxu3 }
 0x134   :  { %v1154_v49 = vpop.eup %1153  ;;  %v290_v50 = vmul.f32 1.442695, %v285_v47  ;;  %v266_v51 = vadd.f32 %v1520_v24, %v265_v48 }
 0x135   :  { %300 = vrot.lane.b32.xlu0 %v1154_v49, %s1386_s7  ;;  %v1156_v55 = vpop.eup %1155 }
 0x136   :  { %1157 = vpow2.f32 %v290_v50  ;;  %v273_v53 = vmax.f32 %v266_v51, -100.0  ;;  %1092 = vmatmul.msk.f32.vlgmr.msrb.gmra.mxu3 %vm229_vm3, %v1156_v55  ;;  %v962_v55 = vlaneseq }
 0x137   :  { %1159 = vtanh.f32 %v158_v54 }
 0x138   :  { %v1545_v56 = vmin.f32 %v273_v53, 85.0 }
 0x13a   :  { %282 = vst.msk [vmem:[#allocation13 + $0x10] sm:$0xff] %vm279_vm4, %v1545_v56  ;;  %v286_v57 = vmul.f32 0.5, %v1545_v56 }
 0x13b   :  { %v268_v58 = vpop.f32.mrf.mxu3 }
 0x13c   :  { %v1158_v59 = vpop.eup %1157  ;;  %v292_v60 = vmul.f32 1.442695, %v286_v57  ;;  %v269_v61 = vadd.f32 %v1520_v24, %v268_v58 }
 0x13d   :  { %302 = vrot.lane.b32.xlu0 %v1158_v59, %s1386_s7  ;;  %v1160_v62 = vpop.eup %1159 }
 0x13e   :  { %v274_v63 = vmax.f32 %v269_v61, -100.0  ;;  %1161 = vpow2.f32 %v292_v60  ;;  %1093 = vmatmul.msk.f32.gmra.mxu3 %vm229_vm3, %v1160_v62  ;;  %v1618_v61 = vand.u32 127, %v962_v55 }
 0x140   :  { %v278_v0 = vmin.f32 %v274_v63, 85.0 }
 0x142   :  { %283 = vst.msk [vmem:[#allocation13 + $0x18] sm:$0xff] %vm279_vm4, %v278_v0  ;;  %v287_v2 = vmul.f32 0.5, %v278_v0 }
 0x143   :  { %1065 = dma.vmem_to_hbm [thread:$0]  %s1058_s19, 512, %s1060_s22, [#allocation14], %s1380_s23, %s1380_s23, %s1381_s12  }
 0x144   :  { %v1162_v3 = vpop.eup %1161  ;;  %v294_v4 = vmul.f32 1.442695, %v287_v2  ;;  %s1047_s23 = sshll.u32 %s1388_s14, 4  ;;  %s1048_s23 = int_to_ptr.vmem [resolvable:$true] %s1047_s23 }
 0x145   :  { %304 = vrot.lane.b32.xlu1 %v1162_v3, %s1386_s7  ;;  %895 = vperm.xlu0 %1138, %v1142_v1   ;;  %v1623_v1 = vadd.s32 4294967288, %v1618_v61 }
 0x146   :  { %1163 = vpow2.f32 %v294_v4  ;;  %v1628_v4 = vadd.s32 4294967280, %v1618_v61 }
 0x147   :  { %1165 = vtanh.f32 %v161_v7 }
 0x148   :  { %1167 = vtanh.f32 %v164_v10  ;;  %v1636_v10 = vadd.s32 4294967272, %v1618_v61 }
 0x14c   :  { %v1164_v5 = vpop.eup %1163 }
 0x14d   :  { %306 = vrot.lane.b32.xlu1 %v1164_v5, %s1386_s7  ;;  %v1166_v9 = vpop.eup %1165 }
 0x14e   :  { %1094 = vmatmul.msk.f32.gmra.mxu3 %vm229_vm3, %v1166_v9  ;;  %v1168_v11 = vpop.eup %1167 }
 0x156   :  { %1095 = vmatmul.msk.f32.gmra.mxu3 %vm229_vm3, %v1168_v11 }
 0x1a7   :  { %v301_v13 = vpop.permute.xlu0 %300 }
 0x1a8   :  { %v312_v14 = vmul.f32 %v301_v13, %v115_v12 }
 0x1aa   :  { %v316_v15 = vadd.f32 %v312_v14, %v1523_v28 }
 0x1ac   :  { %373 = vst.msk [vmem:[#allocation2] sm:$0xff] %vm229_vm3, %v316_v15  ;;  %1096 = vmatmul.msk.f32.vlgmr.msrb.gmra.mxu0 %vm229_vm3, %v316_v15 }
 0x1af   :  { %v303_v17 = vpop.permute.xlu0 %302 }
 0x1b0   :  { %v313_v18 = vmul.f32 %v303_v17, %v116_v16 }
 0x1b2   :  { %v317_v20 = vadd.f32 %v313_v18, %v1533_v43 }
 0x1b3   :  { %v727_v21 = vld [vmem:[#allocation2] sm:$0xff] }
 0x1b4   :  { %374 = vst.msk [vmem:[#allocation2 + $0x8] sm:$0xff] %vm229_vm3, %v317_v20  ;;  %1097 = vmatmul.msk.f32.gmra.mxu0 %vm229_vm3, %v317_v20  ;;  %v763_v22 = vmul.f32 %v1577_v19, %v727_v21 }
 0x1b6   :  { %v795_v24 = vsel %vm229_vm3, %v763_v22, 0.0 }
 0x1b7   :  { %v305_v25 = vpop.permute.xlu1 %304  ;;  %796 = vadd.xlane.f32.xlu2 %v795_v24  ;;  %v1611_v53 = vpop.permute.xlu0 %895 }
 0x1b8   :  { %v314_v26 = vmul.f32 %v305_v25, %v117_v23 }
 0x1b9   :  { %v357_v41 = vpop.f32.mrf.mxu3 }
 0x1ba   :  { %v318_v27 = vadd.f32 %v314_v26, %v1545_v56  ;;  %v1604_v43 = vadd.f32 %v1144_v42, %v357_v41 }
 0x1bb   :  { %v728_v28 = vld [vmem:[#allocation2 + $0x8] sm:$0xff] }
 0x1bc   :  { %375 = vst.msk [vmem:[#allocation2 + $0x10] sm:$0xff] %vm229_vm3, %v318_v27  ;;  %1098 = vmatmul.msk.f32.gmra.mxu0 %vm229_vm3, %v318_v27  ;;  %v764_v29 = vmul.f32 %v1577_v19, %v728_v28 }
 0x1be   :  { %v798_v31 = vsel %vm229_vm3, %v764_v29, 0.0 }
 0x1bf   :  { %v307_v32 = vpop.permute.xlu1 %306  ;;  %799 = vadd.xlane.f32.xlu2 %v798_v31 }
 0x1c0   :  { %v315_v33 = vmul.f32 %v307_v32, %v118_v30 }
 0x1c1   :  { %v360_v44 = vpop.f32.mrf.mxu3 }
 0x1c2   :  { %v319_v34 = vadd.f32 %v315_v33, %v278_v0  ;;  %v1607_v47 = vadd.f32 %v1144_v42, %v360_v44 }
 0x1c3   :  { %v729_v35 = vld [vmem:[#allocation2 + $0x10] sm:$0xff] }
 0x1c4   :  { %376 = vst.msk [vmem:[#allocation2 + $0x18] sm:$0xff] %vm229_vm3, %v319_v34  ;;  %1099 = vmatmul.msk.f32.gmra.mxu0 %vm229_vm3, %v319_v34  ;;  %v765_v36 = vmul.f32 %v1577_v19, %v729_v35 }
 0x1c6   :  { %v801_v37 = vsel %vm229_vm3, %v765_v36, 0.0 }
 0x1c7   :  { %802 = vadd.xlane.f32.xlu0 %v801_v37 }
 0x1cb   :  { %v730_v38 = vld [vmem:[#allocation2 + $0x18] sm:$0xff] }
 0x1cc   :  { %v766_v39 = vmul.f32 %v1577_v19, %v730_v38 }
 0x1ce   :  { %v804_v40 = vsel %vm229_vm3, %v766_v39, 0.0 }
 0x1cf   :  { %805 = vadd.xlane.f32.xlu1 %v804_v40 }
 0x1d1   :  { %v363_v50 = vpop.f32.mrf.mxu3 }
 0x1d2   :  { %v1614_v54 = vadd.f32 %v1144_v42, %v363_v50 }
 0x1d9   :  { %v366_v0 = vpop.f32.mrf.mxu3 }
 0x1da   :  { %v1631_v6 = vadd.f32 %v1144_v42, %v366_v0 }
 0x229   :  { %v406_v45 = vpop.f32.mrf.mxu0 }
 0x22a   :  { %v407_v46 = vadd.f32 %v406_v45, %v1604_v43  ;;  %v797_v48 = vpop.xlane.xlu2 %796 }
 0x22b   :  { %v898_v7 = vadd.f32 %v1611_v53, %v797_v48 }
 0x22c   :  { %1169 = vtanh.f32 %v407_v46 }
 0x22d   :  { %v964_v16 = vperm.slane %v898_v7, %v1618_v61 }
 0x231   :  { %v409_v49 = vpop.f32.mrf.mxu0 }
 0x232   :  { %v1170_v51 = vpop.eup %1169  ;;  %v410_v52 = vadd.f32 %v409_v49, %v1607_v47  ;;  %v800_v58 = vpop.xlane.xlu2 %799 }
 0x233   :  { %423 = vst.msk [vmem:[#allocation2 + $0x20] sm:$0xff] %vm229_vm3, %v1170_v51  ;;  %1100 = vmatmul.msk.f32.vlgmr.msrb.gmra.mxu1 %vm229_vm3, %v1170_v51  ;;  %v899_v2 = vadd.f32 %v1611_v53, %v800_v58 }
 0x234   :  { %1171 = vtanh.f32 %v410_v52 }
 0x235   :  { %v966_v8 = vperm.slane %v899_v2, %v1623_v1 }
 0x237   :  { %v968_v20 = vsel %vm967_vm5, %v966_v8, %v964_v16 }
 0x239   :  { %v412_v56 = vpop.f32.mrf.mxu0 }
 0x23a   :  { %v1172_v57 = vpop.eup %1171  ;;  %v413_v59 = vadd.f32 %v412_v56, %v1614_v54  ;;  %v731_v60 = vld [vmem:[#allocation2 + $0x20] sm:$0xff]  ;;  %v803_v62 = vpop.xlane.xlu0 %802 }
 0x23b   :  { %424 = vst.msk [vmem:[#allocation2 + $0x28] sm:$0xff] %vm229_vm3, %v1172_v57  ;;  %1101 = vmatmul.msk.f32.gmra.mxu1 %vm229_vm3, %v1172_v57  ;;  %v767_v63 = vmul.f32 %v1577_v19, %v731_v60  ;;  %v900_v5 = vadd.f32 %v1611_v53, %v803_v62 }
 0x23c   :  { %1173 = vtanh.f32 %v413_v59 }
 0x23d   :  { %v807_v3 = vsel %vm229_vm3, %v767_v63, 0.0  ;;  %v970_v12 = vperm.slane %v900_v5, %v1628_v4 }
 0x23e   :  { %808 = vadd.xlane.f32.xlu2 %v807_v3 }
 0x23f   :  { %v972_v23 = vsel %vm971_vm6, %v970_v12, %v968_v20 }
 0x241   :  { %v415_v9 = vpop.f32.mrf.mxu0 }
 0x242   :  { %v1174_v11 = vpop.eup %1173  ;;  %v416_v13 = vadd.f32 %v415_v9, %v1631_v6  ;;  %v806_v14 = vpop.xlane.xlu1 %805  ;;  %v732_v15 = vld [vmem:[#allocation2 + $0x28] sm:$0xff] }
 0x243   :  { %425 = vst.msk [vmem:[#allocation2 + $0x30] sm:$0xff] %vm229_vm3, %v1174_v11  ;;  %v901_v17 = vadd.f32 %v1611_v53, %v806_v14  ;;  %1102 = vmatmul.msk.f32.gmra.mxu1 %vm229_vm3, %v1174_v11  ;;  %v768_v18 = vmul.f32 %v1577_v19, %v732_v15 }
 0x244   :  { %1175 = vtanh.f32 %v416_v13 }
 0x245   :  { %v974_v21 = vperm.slane %v901_v17, %v1636_v10  ;;  %v810_v22 = vsel %vm229_vm3, %v768_v18, 0.0 }
 0x246   :  { %811 = vadd.xlane.f32.xlu2 %v810_v22 }
 0x247   :  { %v976_v24 = vsel %vm975_vm7, %v974_v21, %v972_v23 }
 0x24a   :  { %v1176_v25 = vpop.eup %1175  ;;  %v733_v26 = vld [vmem:[#allocation2 + $0x30] sm:$0xff] }
 0x24b   :  { %426 = vst.msk [vmem:[#allocation2 + $0x38] sm:$0xff] %vm229_vm3, %v1176_v25  ;;  %1103 = vmatmul.msk.f32.gmra.mxu1 %vm229_vm3, %v1176_v25  ;;  %v769_v27 = vmul.f32 %v1577_v19, %v733_v26 }
 0x24d   :  { %v813_v28 = vsel %vm229_vm3, %v769_v27, 0.0 }
 0x24e   :  { %814 = vadd.xlane.f32.xlu2 %v813_v28 }
 0x252   :  { %v734_v29 = vld [vmem:[#allocation2 + $0x38] sm:$0xff] }
 0x253   :  { %v770_v30 = vmul.f32 %v1577_v19, %v734_v29 }
 0x255   :  { %v816_v31 = vsel %vm229_vm3, %v770_v30, 0.0 }
 0x256   :  { %817 = vadd.xlane.f32.xlu2 %v816_v31 }
 0x2b0   :  { %v456_v32 = vpop.f32.mrf.mxu1 }
 0x2b1   :  { %v457_v33 = vadd.f32 %v456_v32, %v1604_v43  ;;  %v809_v34 = vpop.xlane.xlu2 %808 }
 0x2b2   :  { %v902_v35 = vadd.f32 %v1611_v53, %v809_v34 }
 0x2b3   :  { %1177 = vtanh.f32 %v457_v33 }
 0x2b4   :  { %v977_v41 = vperm.slane %v902_v35, %v1618_v61 }
 0x2b8   :  { %v459_v36 = vpop.f32.mrf.mxu1 }
 0x2b9   :  { %v1178_v37 = vpop.eup %1177  ;;  %v460_v38 = vadd.f32 %v459_v36, %v1607_v47  ;;  %v812_v39 = vpop.xlane.xlu2 %811 }
 0x2ba   :  { %473 = vst.msk [vmem:[#allocation2 + $0x40] sm:$0xff] %vm229_vm3, %v1178_v37  ;;  %v903_v40 = vadd.f32 %v1611_v53, %v812_v39  ;;  %1104 = vmatmul.msk.f32.vlgmr.msrb.gmra.mxu2 %vm229_vm3, %v1178_v37 }
 0x2bb   :  { %1179 = vtanh.f32 %v460_v38 }
 0x2bc   :  { %v978_v42 = vperm.slane %v903_v40, %v1623_v1 }
 0x2be   :  { %v979_v44 = vsel %vm967_vm5, %v978_v42, %v977_v41 }
 0x2c0   :  { %v462_v45 = vpop.f32.mrf.mxu1 }
 0x2c1   :  { %v1180_v46 = vpop.eup %1179  ;;  %v463_v48 = vadd.f32 %v462_v45, %v1614_v54  ;;  %v815_v49 = vpop.xlane.xlu2 %814  ;;  %v735_v50 = vld [vmem:[#allocation2 + $0x40] sm:$0xff] }
 0x2c2   :  { %474 = vst.msk [vmem:[#allocation2 + $0x48] sm:$0xff] %vm229_vm3, %v1180_v46  ;;  %v904_v51 = vadd.f32 %v1611_v53, %v815_v49  ;;  %1105 = vmatmul.msk.f32.gmra.mxu2 %vm229_vm3, %v1180_v46  ;;  %v771_v52 = vmul.f32 %v1577_v19, %v735_v50 }
 0x2c3   :  { %1181 = vtanh.f32 %v463_v48 }
 0x2c4   :  { %v980_v55 = vperm.slane %v904_v51, %v1628_v4  ;;  %v819_v56 = vsel %vm229_vm3, %v771_v52, 0.0 }
 0x2c5   :  { %820 = vadd.xlane.f32.xlu2 %v819_v56 }
 0x2c6   :  { %v981_v57 = vsel %vm971_vm6, %v980_v55, %v979_v44 }
 0x2c8   :  { %v465_v58 = vpop.f32.mrf.mxu1 }
 0x2c9   :  { %v1182_v59 = vpop.eup %1181  ;;  %v466_v60 = vadd.f32 %v465_v58, %v1631_v6  ;;  %v818_v62 = vpop.xlane.xlu2 %817  ;;  %v736_v63 = vld [vmem:[#allocation2 + $0x48] sm:$0xff] }
 0x2ca   :  { %475 = vst.msk [vmem:[#allocation2 + $0x50] sm:$0xff] %vm229_vm3, %v1182_v59  ;;  %v905_v0 = vadd.f32 %v1611_v53, %v818_v62  ;;  %1106 = vmatmul.msk.f32.gmra.mxu2 %vm229_vm3, %v1182_v59  ;;  %v772_v2 = vmul.f32 %v1577_v19, %v736_v63 }
 0x2cb   :  { %1183 = vtanh.f32 %v466_v60 }
 0x2cc   :  { %v982_v3 = vperm.slane %v905_v0, %v1636_v10  ;;  %v822_v5 = vsel %vm229_vm3, %v772_v2, 0.0 }
 0x2cd   :  { %823 = vadd.xlane.f32.xlu2 %v822_v5 }
 0x2ce   :  { %v983_v7 = vsel %vm975_vm7, %v982_v3, %v981_v57 }
 0x2cf   :  { %v1027_v8 = vsel %vm1026_vm8, %v983_v7, %v976_v24 }
 0x2d1   :  { %v1184_v9 = vpop.eup %1183  ;;  %v737_v11 = vld [vmem:[#allocation2 + $0x50] sm:$0xff] }
 0x2d2   :  { %476 = vst.msk [vmem:[#allocation2 + $0x58] sm:$0xff] %vm229_vm3, %v1184_v9  ;;  %1107 = vmatmul.msk.f32.gmra.mxu2 %vm229_vm3, %v1184_v9  ;;  %v773_v12 = vmul.f32 %v1577_v19, %v737_v11 }
 0x2d4   :  { %v825_v13 = vsel %vm229_vm3, %v773_v12, 0.0 }
 0x2d5   :  { %826 = vadd.xlane.f32.xlu0 %v825_v13 }
 0x2d9   :  { %v738_v14 = vld [vmem:[#allocation2 + $0x58] sm:$0xff] }
 0x2da   :  { %v774_v15 = vmul.f32 %v1577_v19, %v738_v14 }
 0x2dc   :  { %v828_v16 = vsel %vm229_vm3, %v774_v15, 0.0 }
 0x2dd   :  { %829 = vadd.xlane.f32.xlu1 %v828_v16 }
 0x338   :  { %v821_v17 = vpop.xlane.xlu2 %820 }
 0x339   :  { %v906_v21 = vadd.f32 %v1611_v53, %v821_v17 }
 0x33b   :  { %v984_v24 = vperm.slane %v906_v21, %v1618_v61 }
 0x33d   :  { %v506_v18 = vpop.f32.mrf.mxu2 }
 0x33e   :  { %v507_v20 = vadd.f32 %v506_v18, %v1604_v43 }
 0x340   :  { %1185 = vtanh.f32 %v507_v20  ;;  %v824_v22 = vpop.xlane.xlu2 %823 }
 0x341   :  { %v907_v23 = vadd.f32 %v1611_v53, %v824_v22 }
 0x343   :  { %v985_v25 = vperm.slane %v907_v23, %v1623_v1 }
 0x345   :  { %v986_v26 = vsel %vm967_vm5, %v985_v25, %v984_v24  ;;  %v509_v27 = vpop.f32.mrf.mxu2 }
 0x346   :  { %v1186_v28 = vpop.eup %1185  ;;  %v510_v29 = vadd.f32 %v509_v27, %v1607_v47 }
 0x347   :  { %523 = vst.msk [vmem:[#allocation2 + $0x60] sm:$0xff] %vm229_vm3, %v1186_v28  ;;  %1108 = vmatmul.msk.f32.vlgmr.msra.gmra.mxu3 %vm229_vm3, %v1186_v28 }
 0x348   :  { %1187 = vtanh.f32 %v510_v29  ;;  %v827_v30 = vpop.xlane.xlu0 %826 }
 0x349   :  { %v908_v31 = vadd.f32 %v1611_v53, %v827_v30 }
 0x34b   :  { %v987_v37 = vperm.slane %v908_v31, %v1628_v4 }
 0x34d   :  { %v512_v32 = vpop.f32.mrf.mxu2  ;;  %v988_v42 = vsel %vm971_vm6, %v987_v37, %v986_v26 }
 0x34e   :  { %v1188_v33 = vpop.eup %1187  ;;  %v513_v34 = vadd.f32 %v512_v32, %v1614_v54  ;;  %v739_v35 = vld [vmem:[#allocation2 + $0x60] sm:$0xff] }
 0x34f   :  { %524 = vst.msk [vmem:[#allocation2 + $0x68] sm:$0xff] %vm229_vm3, %v1188_v33  ;;  %1109 = vmatmul.msk.f32.gmra.mxu3 %vm229_vm3, %v1188_v33  ;;  %v775_v36 = vmul.f32 %v1577_v19, %v739_v35 }
 0x350   :  { %1189 = vtanh.f32 %v513_v34  ;;  %v830_v38 = vpop.xlane.xlu1 %829 }
 0x351   :  { %v909_v39 = vadd.f32 %v1611_v53, %v830_v38  ;;  %v831_v40 = vsel %vm229_vm3, %v775_v36, 0.0 }
 0x352   :  { %832 = vadd.xlane.f32.xlu2 %v831_v40 }
 0x353   :  { %v989_v41 = vperm.slane %v909_v39, %v1636_v10 }
 0x355   :  { %v990_v44 = vsel %vm975_vm7, %v989_v41, %v988_v42  ;;  %v515_v45 = vpop.f32.mrf.mxu2 }
 0x356   :  { %v1190_v46 = vpop.eup %1189  ;;  %v1707_v48 = vsel %vm1028_vm9, %v990_v44, %v1027_v8  ;;  %v516_v49 = vadd.f32 %v515_v45, %v1631_v6  ;;  %v740_v50 = vld [vmem:[#allocation2 + $0x68] sm:$0xff] }
 0x357   :  { %525 = vst.msk [vmem:[#allocation2 + $0x70] sm:$0xff] %vm229_vm3, %v1190_v46  ;;  %1110 = vmatmul.msk.f32.gmra.mxu3 %vm229_vm3, %v1190_v46  ;;  %v776_v51 = vmul.f32 %v1577_v19, %v740_v50 }
 0x358   :  { %1191 = vtanh.f32 %v516_v49 }
 0x359   :  { %v834_v52 = vsel %vm229_vm3, %v776_v51, 0.0 }
 0x35a   :  { %835 = vadd.xlane.f32.xlu0 %v834_v52 }
 0x35e   :  { %v1192_v55 = vpop.eup %1191  ;;  %v741_v56 = vld [vmem:[#allocation2 + $0x70] sm:$0xff] }
 0x35f   :  { %526 = vst.msk [vmem:[#allocation2 + $0x78] sm:$0xff] %vm229_vm3, %v1192_v55  ;;  %1111 = vmatmul.msk.f32.gmra.mxu3 %vm229_vm3, %v1192_v55  ;;  %v777_v57 = vmul.f32 %v1577_v19, %v741_v56 }
 0x361   :  { %v837_v58 = vsel %vm229_vm3, %v777_v57, 0.0 }
 0x362   :  { %838 = vadd.xlane.f32.xlu1 %v837_v58 }
 0x366   :  { %v742_v59 = vld [vmem:[#allocation2 + $0x78] sm:$0xff] }
 0x367   :  { %v778_v60 = vmul.f32 %v1577_v19, %v742_v59 }
 0x369   :  { %v840_v62 = vsel %vm229_vm3, %v778_v60, 0.0 }
 0x36a   :  { %841 = vadd.xlane.f32.xlu2 %v840_v62 }
 0x3ca   :  { %v556_v63 = vpop.f32.mrf.mxu3 }
 0x3cb   :  { %v557_v0 = vadd.f32 %v556_v63, %v1604_v43 }
 0x3cd   :  { %1193 = vtanh.f32 %v557_v0 }
 0x3d2   :  { %v559_v2 = vpop.f32.mrf.mxu3 }
 0x3d3   :  { %v1194_v3 = vpop.eup %1193  ;;  %v560_v5 = vadd.f32 %v559_v2, %v1607_v47 }
 0x3d4   :  { %573 = vst.msk [vmem:[#allocation2 + $0x80] sm:$0xff] %vm229_vm3, %v1194_v3  ;;  %1112 = vmatmul.msk.f32.vlgmr.msra.gmra.mxu0 %vm229_vm3, %v1194_v3 }
 0x3d5   :  { %1195 = vtanh.f32 %v560_v5 }
 0x3da   :  { %v562_v7 = vpop.f32.mrf.mxu3 }
 0x3db   :  { %v1196_v8 = vpop.eup %1195  ;;  %v563_v9 = vadd.f32 %v562_v7, %v1614_v54  ;;  %v743_v11 = vld [vmem:[#allocation2 + $0x80] sm:$0xff] }
 0x3dc   :  { %574 = vst.msk [vmem:[#allocation2 + $0x88] sm:$0xff] %vm229_vm3, %v1196_v8  ;;  %1113 = vmatmul.msk.f32.gmra.mxu0 %vm229_vm3, %v1196_v8  ;;  %v779_v12 = vmul.f32 %v1577_v19, %v743_v11 }
 0x3dd   :  { %1197 = vtanh.f32 %v563_v9 }
 0x3de   :  { %v843_v13 = vsel %vm229_vm3, %v779_v12, 0.0 }
 0x3df   :  { %844 = vadd.xlane.f32.xlu0 %v843_v13 }
 0x3e2   :  { %v565_v14 = vpop.f32.mrf.mxu3 }
 0x3e3   :  { %v1198_v15 = vpop.eup %1197  ;;  %v566_v16 = vadd.f32 %v565_v14, %v1631_v6  ;;  %v744_v17 = vld [vmem:[#allocation2 + $0x88] sm:$0xff] }
 0x3e4   :  { %575 = vst.msk [vmem:[#allocation2 + $0x90] sm:$0xff] %vm229_vm3, %v1198_v15  ;;  %1114 = vmatmul.msk.f32.gmra.mxu0 %vm229_vm3, %v1198_v15  ;;  %v780_v18 = vmul.f32 %v1577_v19, %v744_v17 }
 0x3e5   :  { %1199 = vtanh.f32 %v566_v16 }
 0x3e6   :  { %v846_v20 = vsel %vm229_vm3, %v780_v18, 0.0 }
 0x3e7   :  { %847 = vadd.xlane.f32.xlu1 %v846_v20 }
 0x3eb   :  { %v1200_v21 = vpop.eup %1199  ;;  %v745_v22 = vld [vmem:[#allocation2 + $0x90] sm:$0xff] }
 0x3ec   :  { %576 = vst.msk [vmem:[#allocation2 + $0x98] sm:$0xff] %vm229_vm3, %v1200_v21  ;;  %1115 = vmatmul.msk.f32.gmra.mxu0 %vm229_vm3, %v1200_v21  ;;  %v781_v23 = vmul.f32 %v1577_v19, %v745_v22 }
 0x3ee   :  { %v849_v24 = vsel %vm229_vm3, %v781_v23, 0.0 }
 0x3ef   :  { %850 = vadd.xlane.f32.xlu2 %v849_v24 }
 0x3f3   :  { %v746_v25 = vld [vmem:[#allocation2 + $0x98] sm:$0xff] }
 0x3f4   :  { %v782_v26 = vmul.f32 %v1577_v19, %v746_v25 }
 0x3f6   :  { %v852_v27 = vsel %vm229_vm3, %v782_v26, 0.0 }
 0x3f7   :  { %853 = vadd.xlane.f32.xlu1 %v852_v27 }
 0x451   :  { %v606_v28 = vpop.f32.mrf.mxu0 }
 0x452   :  { %v607_v29 = vadd.f32 %v606_v28, %v1604_v43 }
 0x454   :  { %1201 = vtanh.f32 %v607_v29 }
 0x459   :  { %v609_v30 = vpop.f32.mrf.mxu0 }
 0x45a   :  { %v1202_v31 = vpop.eup %1201  ;;  %v610_v32 = vadd.f32 %v609_v30, %v1607_v47 }
 0x45b   :  { %623 = vst.msk [vmem:[#allocation2 + $0xa0] sm:$0xff] %vm229_vm3, %v1202_v31  ;;  %1116 = vmatmul.msk.f32.vlgmr.msra.gmra.mxu1 %vm229_vm3, %v1202_v31 }
 0x45c   :  { %1203 = vtanh.f32 %v610_v32 }
 0x461   :  { %v612_v33 = vpop.f32.mrf.mxu0 }
 0x462   :  { %v1204_v34 = vpop.eup %1203  ;;  %v613_v35 = vadd.f32 %v612_v33, %v1614_v54  ;;  %v747_v36 = vld [vmem:[#allocation2 + $0xa0] sm:$0xff] }
 0x463   :  { %624 = vst.msk [vmem:[#allocation2 + $0xa8] sm:$0xff] %vm229_vm3, %v1204_v34  ;;  %1117 = vmatmul.msk.f32.gmra.mxu1 %vm229_vm3, %v1204_v34  ;;  %v783_v37 = vmul.f32 %v1577_v19, %v747_v36 }
 0x464   :  { %1205 = vtanh.f32 %v613_v35 }
 0x465   :  { %v855_v38 = vsel %vm229_vm3, %v783_v37, 0.0 }
 0x466   :  { %856 = vadd.xlane.f32.xlu1 %v855_v38 }
 0x469   :  { %v615_v39 = vpop.f32.mrf.mxu0 }
 0x46a   :  { %v1206_v40 = vpop.eup %1205  ;;  %v616_v41 = vadd.f32 %v615_v39, %v1631_v6  ;;  %v748_v42 = vld [vmem:[#allocation2 + $0xa8] sm:$0xff] }
 0x46b   :  { %625 = vst.msk [vmem:[#allocation2 + $0xb0] sm:$0xff] %vm229_vm3, %v1206_v40  ;;  %1118 = vmatmul.msk.f32.gmra.mxu1 %vm229_vm3, %v1206_v40  ;;  %v784_v44 = vmul.f32 %v1577_v19, %v748_v42 }
 0x46c   :  { %1207 = vtanh.f32 %v616_v41 }
 0x46d   :  { %v858_v45 = vsel %vm229_vm3, %v784_v44, 0.0  ;;  %v833_v44 = vpop.xlane.xlu2 %832 }
 0x46e   :  { %859 = vadd.xlane.f32.xlu2 %v858_v45  ;;  %v839_v45 = vpop.xlane.xlu1 %838 }
 0x472   :  { %v1208_v46 = vpop.eup %1207  ;;  %v749_v49 = vld [vmem:[#allocation2 + $0xb0] sm:$0xff] }
 0x473   :  { %626 = vst.msk [vmem:[#allocation2 + $0xb8] sm:$0xff] %vm229_vm3, %v1208_v46  ;;  %1119 = vmatmul.msk.f32.gmra.mxu1 %vm229_vm3, %v1208_v46  ;;  %v785_v50 = vmul.f32 %v1577_v19, %v749_v49 }
 0x475   :  { %v861_v51 = vsel %vm229_vm3, %v785_v50, 0.0  ;;  %v842_v46 = vpop.xlane.xlu2 %841 }
 0x476   :  { %862 = vadd.xlane.f32.xlu2 %v861_v51  ;;  %v848_v49 = vpop.xlane.xlu1 %847 }
 0x47a   :  { %v750_v52 = vld [vmem:[#allocation2 + $0xb8] sm:$0xff] }
 0x47b   :  { %v786_v55 = vmul.f32 %v1577_v19, %v750_v52 }
 0x47d   :  { %v864_v56 = vsel %vm229_vm3, %v786_v55, 0.0  ;;  %v851_v50 = vpop.xlane.xlu2 %850 }
 0x47e   :  { %865 = vadd.xlane.f32.xlu1 %v864_v56  ;;  %v854_v51 = vpop.xlane.xlu1 %853 }
 0x4d8   :  { %v656_v57 = vpop.f32.mrf.mxu1 }
 0x4d9   :  { %v657_v58 = vadd.f32 %v656_v57, %v1604_v43  ;;  %v857_v55 = vpop.xlane.xlu1 %856 }
 0x4db   :  { %1209 = vtanh.f32 %v657_v58 }
 0x4e0   :  { %v659_v59 = vpop.f32.mrf.mxu1 }
 0x4e1   :  { %v1210_v60 = vpop.eup %1209  ;;  %v660_v62 = vadd.f32 %v659_v59, %v1607_v47  ;;  %v860_v52 = vpop.xlane.xlu2 %859 }
 0x4e2   :  { %673 = vst.msk [vmem:[#allocation2 + $0xc0] sm:$0xff] %vm229_vm3, %v1210_v60  ;;  %1120 = vmatmul.msk.f32.vlgmr.msra.gmra.mxu2 %vm229_vm3, %v1210_v60  ;;  %v836_v59 = vpop.xlane.xlu0 %835 }
 0x4e3   :  { %1211 = vtanh.f32 %v660_v62  ;;  %v911_v62 = vadd.f32 %v1611_v53, %v836_v59 }
 0x4e8   :  { %v662_v63 = vpop.f32.mrf.mxu1 }
 0x4e9   :  { %v1212_v0 = vpop.eup %1211  ;;  %v663_v2 = vadd.f32 %v662_v63, %v1614_v54  ;;  %v751_v3 = vld [vmem:[#allocation2 + $0xc0] sm:$0xff]  ;;  %v863_v56 = vpop.xlane.xlu2 %862 }
 0x4ea   :  { %674 = vst.msk [vmem:[#allocation2 + $0xc8] sm:$0xff] %vm229_vm3, %v1212_v0  ;;  %1121 = vmatmul.msk.f32.gmra.mxu2 %vm229_vm3, %v1212_v0  ;;  %v787_v5 = vmul.f32 %v1577_v19, %v751_v3  ;;  %v845_v60 = vpop.xlane.xlu0 %844  ;;  %v912_v3 = vadd.f32 %v1611_v53, %v839_v45 }
 0x4eb   :  { %1213 = vtanh.f32 %v663_v2  ;;  %v910_v2 = vadd.f32 %v1611_v53, %v833_v44 }
 0x4ec   :  { %v867_v7 = vsel %vm229_vm3, %v787_v5, 0.0  ;;  %v992_v5 = vperm.slane %v911_v62, %v1623_v1 }
 0x4ed   :  { %868 = vadd.xlane.f32.xlu1 %v867_v7  ;;  %v915_v7 = vadd.f32 %v1611_v53, %v848_v49 }
 0x4f0   :  { %v665_v8 = vpop.f32.mrf.mxu1 }
 0x4f1   :  { %v1214_v9 = vpop.eup %1213  ;;  %v666_v11 = vadd.f32 %v665_v8, %v1631_v6  ;;  %v752_v12 = vld [vmem:[#allocation2 + $0xc8] sm:$0xff]  ;;  %v866_v57 = vpop.xlane.xlu1 %865  ;;  %v913_v8 = vadd.f32 %v1611_v53, %v842_v46 }
 0x4f2   :  { %675 = vst.msk [vmem:[#allocation2 + $0xd0] sm:$0xff] %vm229_vm3, %v1214_v9  ;;  %1122 = vmatmul.msk.f32.gmra.mxu2 %vm229_vm3, %v1214_v9  ;;  %v788_v13 = vmul.f32 %v1577_v19, %v752_v12  ;;  %v991_v9 = vperm.slane %v910_v2, %v1618_v61  ;;  %v916_v12 = vadd.f32 %v1611_v53, %v851_v50 }
 0x4f3   :  { %1215 = vtanh.f32 %v666_v11  ;;  %v914_v11 = vadd.f32 %v1611_v53, %v845_v60 }
 0x4f4   :  { %v870_v14 = vsel %vm229_vm3, %v788_v13, 0.0  ;;  %v994_v13 = vperm.slane %v912_v3, %v1628_v4 }
 0x4f5   :  { %871 = vadd.xlane.f32.xlu2 %v870_v14  ;;  %v917_v14 = vadd.f32 %v1611_v53, %v854_v51 }
 0x4f9   :  { %v1216_v15 = vpop.eup %1215  ;;  %v753_v16 = vld [vmem:[#allocation2 + $0xd0] sm:$0xff] }
 0x4fa   :  { %676 = vst.msk [vmem:[#allocation2 + $0xd8] sm:$0xff] %vm229_vm3, %v1216_v15  ;;  %1123 = vmatmul.msk.f32.gmra.mxu2 %vm229_vm3, %v1216_v15  ;;  %v789_v17 = vmul.f32 %v1577_v19, %v753_v16  ;;  %v919_v15 = vadd.f32 %v1611_v53, %v860_v52 }
 0x4fc   :  { %v873_v18 = vsel %vm229_vm3, %v789_v17, 0.0  ;;  %v993_v17 = vsel %vm967_vm5, %v992_v5, %v991_v9 }
 0x4fd   :  { %874 = vadd.xlane.f32.xlu2 %v873_v18  ;;  %v999_v18 = vperm.slane %v915_v7, %v1623_v1 }
 0x501   :  { %v754_v20 = vld [vmem:[#allocation2 + $0xd8] sm:$0xff] }
 0x502   :  { %v790_v21 = vmul.f32 %v1577_v19, %v754_v20  ;;  %v920_v20 = vadd.f32 %v1611_v53, %v863_v56 }
 0x504   :  { %v876_v22 = vsel %vm229_vm3, %v790_v21, 0.0 }
 0x505   :  { %877 = vadd.xlane.f32.xlu0 %v876_v22 }
 0x565   :  { %v706_v23 = vpop.f32.mrf.mxu2 }
 0x566   :  { %v707_v24 = vadd.f32 %v706_v23, %v1604_v43  ;;  %v996_v23 = vperm.slane %v913_v8, %v1636_v10 }
 0x568   :  { %1217 = vtanh.f32 %v707_v24  ;;  %v872_v58 = vpop.xlane.xlu2 %871  ;;  %v918_v24 = vadd.f32 %v1611_v53, %v857_v55 }
 0x569   :  { %v923_v21 = vadd.f32 %v1611_v53, %v872_v58 }
 0x56d   :  { %v709_v25 = vpop.f32.mrf.mxu2 }
 0x56e   :  { %v1218_v26 = vpop.eup %1217  ;;  %v710_v27 = vadd.f32 %v709_v25, %v1607_v47  ;;  %v921_v25 = vadd.f32 %v1611_v53, %v866_v57 }
 0x56f   :  { %723 = vst.msk [vmem:[#allocation2 + $0xe0] sm:$0xff] %vm229_vm3, %v1218_v26 }
 0x570   :  { %1219 = vtanh.f32 %v710_v27  ;;  %v875_v63 = vpop.xlane.xlu2 %874 }
 0x571   :  { %v924_v26 = vadd.f32 %v1611_v53, %v875_v63 }
 0x575   :  { %v712_v28 = vpop.f32.mrf.mxu2 }
 0x576   :  { %v1220_v29 = vpop.eup %1219  ;;  %v713_v30 = vadd.f32 %v712_v28, %v1614_v54  ;;  %v755_v31 = vld [vmem:[#allocation2 + $0xe0] sm:$0xff]  ;;  %v998_v28 = vperm.slane %v914_v11, %v1618_v61 }
 0x577   :  { %724 = vst.msk [vmem:[#allocation2 + $0xe8] sm:$0xff] %vm229_vm3, %v1220_v29  ;;  %v791_v32 = vmul.f32 %v1577_v19, %v755_v31  ;;  %v1001_v29 = vperm.slane %v916_v12, %v1628_v4 }
 0x578   :  { %1221 = vtanh.f32 %v713_v30  ;;  %v878_v16 = vpop.xlane.xlu0 %877 }
 0x579   :  { %v879_v43 = vsel %vm229_vm3, %v791_v32, 0.0  ;;  %v925_v31 = vadd.f32 %v1611_v53, %v878_v16  ;;  %v995_v32 = vsel %vm971_vm6, %v994_v13, %v993_v17 }
 0x57a   :  { %880 = vadd.xlane.f32.xlu1 %v879_v43  ;;  %v1003_v43 = vperm.slane %v917_v14, %v1636_v10 }
 0x57b   :  { %v1017_v44 = vperm.slane %v925_v31, %v1636_v10 }
 0x57d   :  { %v715_v33 = vpop.f32.mrf.mxu2 }
 0x57e   :  { %v1222_v34 = vpop.eup %1221  ;;  %v716_v47 = vadd.f32 %v715_v33, %v1631_v6  ;;  %v756_v35 = vld [vmem:[#allocation2 + $0xe8] sm:$0xff]  ;;  %v1006_v33 = vperm.slane %v919_v15, %v1623_v1 }
 0x57f   :  { %725 = vst.msk [vmem:[#allocation2 + $0xf0] sm:$0xff] %vm229_vm3, %v1222_v34  ;;  %v792_v36 = vmul.f32 %v1577_v19, %v756_v35  ;;  %v1008_v35 = vperm.slane %v920_v20, %v1628_v4 }
 0x580   :  { %1223 = vtanh.f32 %v716_v47  ;;  %v1000_v47 = vsel %vm967_vm5, %v999_v18, %v998_v28 }
 0x581   :  { %v882_v54 = vsel %vm229_vm3, %v792_v36, 0.0  ;;  %v1013_v36 = vperm.slane %v923_v21, %v1623_v1 }
 0x582   :  { %883 = vadd.xlane.f32.xlu2 %v882_v54 }
 0x586   :  { %v1224_v37 = vpop.eup %1223  ;;  %v757_v38 = vld [vmem:[#allocation2 + $0xf0] sm:$0xff] }
 0x587   :  { %726 = vst.msk [vmem:[#allocation2 + $0xf8] sm:$0xff] %vm229_vm3, %v1224_v37  ;;  %v793_v39 = vmul.f32 %v1577_v19, %v757_v38  ;;  %v1005_v37 = vperm.slane %v918_v24, %v1618_v61  ;;  %v1010_v38 = vperm.slane %v921_v25, %v1636_v10 }
 0x589   :  { %v885_v40 = vsel %vm229_vm3, %v793_v39, 0.0  ;;  %v1015_v39 = vperm.slane %v924_v26, %v1628_v4  ;;  %v1007_v46 = vsel %vm967_vm5, %v1006_v33, %v1005_v37 }
 0x58a   :  { %886 = vadd.xlane.f32.xlu1 %v885_v40  ;;  %v1009_v50 = vsel %vm971_vm6, %v1008_v35, %v1007_v46 }
 0x58b   :  { %v1011_v56 = vsel %vm975_vm7, %v1010_v38, %v1009_v50 }
 0x58e   :  { %v758_v6 = vld [vmem:[#allocation2 + $0xf8] sm:$0xff] }
 0x58f   :  { %v794_v41 = vmul.f32 %v1577_v19, %v758_v6  ;;  %v869_v19 = vpop.xlane.xlu1 %868  ;;  %v997_v6 = vsel %vm975_vm7, %v996_v23, %v995_v32 }
 0x590   :  { %v922_v30 = vadd.f32 %v1611_v53, %v869_v19  ;;  %v1031_v19 = vsel %vm1030_vm10, %v997_v6, %v1707_v48 }
 0x591   :  { %v888_v42 = vsel %vm229_vm3, %v794_v41, 0.0  ;;  %v1002_v41 = vsel %vm971_vm6, %v1001_v29, %v1000_v47 }
 0x592   :  { %889 = vadd.xlane.f32.xlu2 %v888_v42  ;;  %v1012_v42 = vperm.slane %v922_v30, %v1618_v61  ;;  %v1004_v45 = vsel %vm975_vm7, %v1003_v43, %v1002_v41 }
 0x594   :  { %v1014_v51 = vsel %vm967_vm5, %v1013_v36, %v1012_v42 }
 0x595   :  { %v1016_v57 = vsel %vm971_vm6, %v1015_v39, %v1014_v51 }
 0x5ed   :  { %v881_v0 = vpop.xlane.xlu1 %880 }
 0x5ee   :  { %v926_v40 = vadd.f32 %v1611_v53, %v881_v0 }
 0x5f0   :  { %v1019_v58 = vperm.slane %v926_v40, %v1618_v61 }
 0x5f5   :  { %v884_v22 = vpop.xlane.xlu2 %883 }
 0x5f6   :  { %v927_v34 = vadd.f32 %v1611_v53, %v884_v22 }
 0x5f8   :  { %v1020_v49 = vperm.slane %v927_v34, %v1623_v1  ;;  %v1018_v1 = vsel %vm975_vm7, %v1017_v44, %v1016_v57 }
 0x5fa   :  { %v1021_v60 = vsel %vm967_vm5, %v1020_v49, %v1019_v58 }
 0x5fd   :  { %v887_v27 = vpop.xlane.xlu1 %886 }
 0x5fe   :  { %v928_v54 = vadd.f32 %v1611_v53, %v887_v27 }
 0x600   :  { %v1022_v52 = vperm.slane %v928_v54, %v1628_v4  ;;  %v1033_v4 = vsel %vm1032_vm11, %v1004_v45, %v1031_v19 }
 0x602   :  { %v1023_v48 = vsel %vm971_vm6, %v1022_v52, %v1021_v60 }
 0x605   :  { %v890_v55 = vpop.xlane.xlu2 %889 }
 0x606   :  { %v929_v59 = vadd.f32 %v1611_v53, %v890_v55  ;;  %v1035_v53 = vsel %vm1034_vm12, %v1011_v56, %v1033_v4 }
 0x607   :  { %v1037_v63 = vsel %vm1036_vm13, %v1018_v1, %v1035_v53 }
 0x608   :  { %v1024_v61 = vperm.slane %v929_v59, %v1636_v10 }
 0x60a   :  { %v1025_v62 = vsel %vm975_vm7, %v1024_v61, %v1023_v48 }
 0x60b   :  { %v1039_v0 = vsel %vm1038_vm14, %v1025_v62, %v1037_v63 }
 0x60c   :  { %1041 = vst.msk [vmem:[#allocation12] sm:$0xff] %vm229_vm3, %v1039_v0 }
 0x60d   :  { %1052 = dma.vmem_to_hbm [thread:$0]  %s1048_s23, 128, %s1050_s25, [#allocation6]  }
 0x60e   :  { %1375 = dma.done.wait [#allocation6], 128  }
 0x60f   :  { %1376 = vsyncadd [#allocation6], 4294967168 }
 0x610   :  { %1377 = dma.done.wait [#allocation14], 512  }
 0x611   :  { %1378 = vsyncadd [#allocation14], 4294966784 }
 0x612   :  { %1074 = vsyncpa [#allocation5], 1 }
 0x613   :  { %1075 = vsyncpa [#allocation8], 1 }
 0x614   :  { %1076 = vsyncpa [#allocation11], 1 }
 0x615   :  { %1077 = vsyncpa [#allocation6], 1 }
 0x616   :  { %1078 = vsyncpa [#allocation14], 1 }

</bundles_post_ra>
